<compile_context>
chip_gen: v6e
topology: v6e:2x2x1
jax: 0.10.0
libtpu: 0.0.40
codegen_flags: <defaults>
</compile_context>

<pallas_src>
import functools

import jax
import jax.numpy as jnp
from jax.experimental import pallas as pl
from jax.experimental.pallas import tpu as pltpu


def _vae_loss_kernel(mean_ref, std_ref, x_ref, y_ref, out_ref, *,
                     beta: float, total_b: int, total_d: int,
                     tile_b: int, tile_d: int):
    i = pl.program_id(0)  # batch tile
    j = pl.program_id(1)  # feature tile (reduction axis, carried accumulator)

    x = x_ref[...].astype(jnp.float32)
    y = y_ref[...].astype(jnp.float32)
    diff = x - y

    ragged_rows = (total_b % tile_b) != 0
    ragged_cols = (total_d % tile_d) != 0
    if ragged_rows or ragged_cols:
        valid = None
        if ragged_rows:
            row = jax.lax.broadcasted_iota(jnp.int32, diff.shape, 0) + i * tile_b
            valid = row < total_b
        if ragged_cols:
            col = jax.lax.broadcasted_iota(jnp.int32, diff.shape, 1) + j * tile_d
            cvalid = col < total_d
            valid = cvalid if valid is None else jnp.logical_and(valid, cvalid)
        diff = jnp.where(valid, diff, 0.0)

    # Partial MSE of this (batch-tile, feature-tile) block, reduced straight
    # to a scalar (masking already applied above).
    mse = jnp.sum(diff * diff)

    @pl.when(j == 0)
    def _init_with_kl():
        mean = mean_ref[...].astype(jnp.float32)
        std = std_ref[...].astype(jnp.float32)
        kl_terms = 1.0 + std - mean * mean - jnp.exp(std)       # (TB, L)
        if ragged_rows:
            row = jax.lax.broadcasted_iota(jnp.int32, kl_terms.shape, 0) \
                + i * tile_b
            kl_terms = jnp.where(row < total_b, kl_terms, 0.0)
        kl = -0.5 * jnp.sum(kl_terms)
        val = (jnp.float32(beta) * kl + mse).astype(jnp.float32)
        out_ref[...] = jnp.broadcast_to(val, out_ref.shape)

    @pl.when(j > 0)
    def _accumulate():
        out_ref[...] += mse


def _vmem_budget_and_limit() -> tuple[int, int]:
    """Generation-aware (budget, vmem_limit) in bytes."""
    vmem_bytes = 64 * 1024 * 1024
    try:
        vmem_bytes = int(pltpu.get_tpu_info().vmem_capacity_bytes)
    except Exception:
        pass
    if vmem_bytes >= 100 * 1024 * 1024:
        # v5e / v6e: 128 MiB physical VMEM.
        return 56 * 1024 * 1024, 96 * 1024 * 1024
    # v7x: 64 MiB per TensorCore.
    return 40 * 1024 * 1024, 56 * 1024 * 1024


def _choose_tiles(b: int, d: int, itemsize: int, budget: int) -> tuple[int, int]:
    """Pick (TB, TD).  Double-buffered x+y blocks plus f32 working copies must
    fit `budget`; per-step DMA volume ends up in the multi-MiB range."""
    # Per element of an x/y tile: 2 arrays * 2 buffers * itemsize + ~3 f32 temps.
    per_elem = 4 * itemsize + 12
    elems = max(budget // per_elem, 8 * 128)

    if b * d <= elems:
        return b, d                                  # whole problem in one tile
    if d * 8 <= elems:
        # Full feature rows fit: tile the batch only.
        tb = min(b, elems // d)
        tb = b if tb >= b else max(8, (tb // 8) * 8)
        return tb, d
    # Feature dim must be tiled (large images).
    tb = b if b <= 8 else 8
    td = elems // tb
    td = d if td >= d else max(128, (td // 128) * 128)
    return tb, td


def vae_loss(mean: jax.Array, std: jax.Array, x: jax.Array, y: jax.Array,
             beta: float = 1.0, tile_b: int | None = None,
             tile_d: int | None = None) -> jax.Array:
    """Pallas-backed VAELoss.forward.  Returns a scalar float32."""
    b = y.shape[0]
    y_flat = y.reshape(b, -1)                 # mirrors y.view(y.shape[0], -1)
    assert x.shape == y_flat.shape, (x.shape, y_flat.shape)
    d = x.shape[1]
    l = mean.shape[1]
    assert std.shape == mean.shape

    itemsize = max(jnp.dtype(x.dtype).itemsize, jnp.dtype(y_flat.dtype).itemsize)
    budget, vmem_limit = _vmem_budget_and_limit()
    auto_tb, auto_td = _choose_tiles(b, d, itemsize, budget)
    tb = auto_tb if tile_b is None else int(tile_b)
    td = auto_td if tile_d is None else int(tile_d)
    assert tb == b or tb % 8 == 0, "tile_b must equal B or be a multiple of 8"
    assert td == d or td % 128 == 0, "tile_d must equal D or be a multiple of 128"

    nb = pl.cdiv(b, tb)
    nd = pl.cdiv(d, td)

    kernel = functools.partial(_vae_loss_kernel, beta=float(beta),
                               total_b=b, total_d=d, tile_b=tb, tile_d=td)

    partials = pl.pallas_call(
        kernel,
        out_shape=jax.ShapeDtypeStruct((nb, 8, 128), jnp.float32),
        grid_spec=pltpu.PrefetchScalarGridSpec(
            num_scalar_prefetch=0,
            grid=(nb, nd),
            in_specs=[
                pl.BlockSpec((tb, l), lambda i, j: (i, 0)),   # mean (no re-DMA over j)
                pl.BlockSpec((tb, l), lambda i, j: (i, 0)),   # std  (log-variance)
                pl.BlockSpec((tb, td), lambda i, j: (i, j)),  # x
                pl.BlockSpec((tb, td), lambda i, j: (i, j)),  # y (flattened)
            ],
            out_specs=pl.BlockSpec((1, 8, 128), lambda i, j: (i, 0, 0)),
        ),
        compiler_params=pltpu.CompilerParams(
            dimension_semantics=("parallel", "arbitrary"),
            vmem_limit_bytes=vmem_limit,
        ),
    )(mean, std, x, y_flat)

    # Per-batch-tile partials (value broadcast across the lane-dense block);
    # final reduce + mean over the true batch size in the wrapper.
    return jnp.sum(partials[:, 0, 0]) / jnp.float32(b)


def vae_loss_ref(mean, std, x, y, beta=1.0):
    """Pure-JAX reference matching the PyTorch semantics."""
    y_flat = y.reshape(y.shape[0], -1)
    mse = jnp.sum((x.astype(jnp.float32) - y_flat.astype(jnp.float32)) ** 2, axis=-1)
    kl = -0.5 * jnp.sum(1.0 + std.astype(jnp.float32)
                        - mean.astype(jnp.float32) ** 2
                        - jnp.exp(std.astype(jnp.float32)), axis=-1)
    return jnp.mean(beta * kl + mse)


if __name__ == "__main__":
    key = jax.random.PRNGKey(0)
    k1, k2, k3, k4 = jax.random.split(key, 4)

    # --- test 1: small shapes from the module spec (single tile) ---
    B, L = 2, 32          # batch, latent dim
    C, H, W = 4, 16, 16   # target image shape -> D = 1024
    D = C * H * W

    mean = jax.random.normal(k1, (B, L), dtype=jnp.float32)
    std = jax.random.normal(k2, (B, L), dtype=jnp.float32) * 0.1
    x = jax.random.normal(k3, (B, D), dtype=jnp.float32)
    y = jax.random.normal(k4, (B, C, H, W), dtype=jnp.float32)

    out = jax.block_until_ready(vae_loss(mean, std, x, y, beta=1.0))
    ref = vae_loss_ref(mean, std, x, y, beta=1.0)
    assert jnp.allclose(out, ref, rtol=1e-5, atol=1e-5), (out, ref)

    # --- test 2: multi-tile 2-D grid with ragged batch rows (exercises the
    #     j-carried accumulator, pl.when KL gating and row masking) ---
    B2 = 10
    k5, k6, k7, k8 = jax.random.split(jax.random.PRNGKey(1), 4)
    mean2 = jax.random.normal(k5, (B2, L), dtype=jnp.float32)
    std2 = jax.random.normal(k6, (B2, L), dtype=jnp.float32) * 0.1
    x2 = jax.random.normal(k7, (B2, D), dtype=jnp.float32)
    y2 = jax.random.normal(k8, (B2, C, H, W), dtype=jnp.float32)

    out2 = jax.block_until_ready(
        vae_loss(mean2, std2, x2, y2, beta=0.5, tile_b=8, tile_d=256))
    ref2 = vae_loss_ref(mean2, std2, x2, y2, beta=0.5)
    assert jnp.allclose(out2, ref2, rtol=1e-5, atol=1e-5), (out2, ref2)

    # --- test 3: ragged feature columns + bf16 inputs (column masking and
    #     in-kernel f32 upcast) ---
    out3 = jax.block_until_ready(
        vae_loss(mean2, std2, x2.astype(jnp.bfloat16),
                 y2.astype(jnp.bfloat16), beta=2.0, tile_b=8, tile_d=384))
    ref3 = vae_loss_ref(mean2, std2, x2.astype(jnp.bfloat16),
                        y2.astype(jnp.bfloat16), beta=2.0)
    assert jnp.allclose(out3, ref3, rtol=2e-2, atol=2e-2), (out3, ref3)

    print("KERNEL_OK")
</pallas_src>

<mosaic_0001>
module attributes {stable_mosaic.version = 11 : i64} {
  func.func @_vae_loss_kernel(%arg0: i32, %arg1: i32, %arg2: memref<2x32xf32, #tpu.memory_space<vmem>>, %arg3: memref<2x32xf32, #tpu.memory_space<vmem>>, %arg4: memref<2x1024xf32, #tpu.memory_space<vmem>>, %arg5: memref<2x1024xf32, #tpu.memory_space<vmem>>, %arg6: memref<1x8x128xf32, #tpu.memory_space<vmem>>) attributes {dimension_semantics = [#tpu.dimension_semantics<parallel>, #tpu.dimension_semantics<arbitrary>], iteration_bounds = array<i64: 1, 1>, scalar_prefetch = 0 : i64, scratch_operands = 0 : i64, tpu.core_type = #tpu.core_type<tc>, window_params = [{transform_indices = @transform_0, window_bounds = array<i64: 2, 32>}, {transform_indices = @transform_1, window_bounds = array<i64: 2, 32>}, {transform_indices = @transform_2, window_bounds = array<i64: 2, 1024>}, {transform_indices = @transform_3, window_bounds = array<i64: 2, 1024>}, {transform_indices = @transform_4, window_bounds = array<i64: 1, 8, 128>}]} {
    %c0 = arith.constant 0 : index
    %c0_0 = arith.constant 0 : index
    %0 = vector.load %arg4[%c0, %c0_0] : memref<2x1024xf32, #tpu.memory_space<vmem>>, vector<2x1024xf32>
    %c0_1 = arith.constant 0 : index
    %c0_2 = arith.constant 0 : index
    %1 = vector.load %arg5[%c0_1, %c0_2] : memref<2x1024xf32, #tpu.memory_space<vmem>>, vector<2x1024xf32>
    %2 = arith.subf %0, %1 : vector<2x1024xf32>
    %3 = arith.mulf %2, %2 : vector<2x1024xf32>
    %4 = vector.shape_cast %3 : vector<2x1024xf32> to vector<1x2x1024xf32>
    %cst = arith.constant dense<0.000000e+00> : vector<1xf32>
    %5 = vector.multi_reduction <add>, %4, %cst [1, 2] : vector<1x2x1024xf32> to vector<1xf32>
    %6 = vector.shape_cast %5 : vector<1xf32> to vector<1x1x1xf32>
    %7 = vector.extract %6[0, 0, 0] : f32 from vector<1x1x1xf32>
    %c0_i32 = arith.constant 0 : i32
    %8 = arith.cmpi eq, %arg1, %c0_i32 : i32
    %9 = arith.extui %8 : i1 to i32
    %c0_i32_3 = arith.constant 0 : i32
    %10 = arith.cmpi ne, %9, %c0_i32_3 : i32
    scf.if %10 {
      %c0_6 = arith.constant 0 : index
      %c0_7 = arith.constant 0 : index
      %14 = vector.load %arg2[%c0_6, %c0_7] : memref<2x32xf32, #tpu.memory_space<vmem>>, vector<2x32xf32>
      %c0_8 = arith.constant 0 : index
      %c0_9 = arith.constant 0 : index
      %15 = vector.load %arg3[%c0_8, %c0_9] : memref<2x32xf32, #tpu.memory_space<vmem>>, vector<2x32xf32>
      %cst_10 = arith.constant 1.000000e+00 : f32
      %16 = vector.broadcast %cst_10 : f32 to vector<2x32xf32>
      %17 = arith.addf %16, %15 : vector<2x32xf32>
      %18 = arith.mulf %14, %14 : vector<2x32xf32>
      %19 = arith.subf %17, %18 : vector<2x32xf32>
      %20 = math.exp %15 : vector<2x32xf32>
      %21 = arith.subf %19, %20 : vector<2x32xf32>
      %22 = vector.shape_cast %21 : vector<2x32xf32> to vector<1x2x32xf32>
      %cst_11 = arith.constant dense<0.000000e+00> : vector<1xf32>
      %23 = vector.multi_reduction <add>, %22, %cst_11 [1, 2] : vector<1x2x32xf32> to vector<1xf32>
      %24 = vector.shape_cast %23 : vector<1xf32> to vector<1x1x1xf32>
      %25 = vector.extract %24[0, 0, 0] : f32 from vector<1x1x1xf32>
      %cst_12 = arith.constant -5.000000e-01 : f32
      %26 = arith.mulf %cst_12, %25 : f32
      %cst_13 = arith.constant 1.000000e+00 : f32
      %27 = arith.mulf %cst_13, %26 : f32
      %28 = arith.addf %27, %7 : f32
      %29 = vector.broadcast %28 : f32 to vector<1x8x128xf32>
      %c0_14 = arith.constant 0 : index
      %c0_15 = arith.constant 0 : index
      %c0_16 = arith.constant 0 : index
      %30 = vector.load %arg6[%c0_14, %c0_15, %c0_16] : memref<1x8x128xf32, #tpu.memory_space<vmem>>, vector<1x8x128xf32>
      tpu.vector_store %arg6[%c0_14, %c0_15, %c0_16], %29 {strides = array<i32>} : memref<1x8x128xf32, #tpu.memory_space<vmem>>, vector<1x8x128xf32>,
    } else {
    }
    %c0_i32_4 = arith.constant 0 : i32
    %11 = arith.cmpi sgt, %arg1, %c0_i32_4 : i32
    %12 = arith.extui %11 : i1 to i32
    %c0_i32_5 = arith.constant 0 : i32
    %13 = arith.cmpi ne, %12, %c0_i32_5 : i32
    scf.if %13 {
      %c0_6 = arith.constant 0 : index
      %c0_7 = arith.constant 0 : index
      %c0_8 = arith.constant 0 : index
      %14 = vector.load %arg6[%c0_6, %c0_7, %c0_8] : memref<1x8x128xf32, #tpu.memory_space<vmem>>, vector<1x8x128xf32>
      %15 = vector.broadcast %7 : f32 to vector<1x8x128xf32>
      %16 = arith.addf %14, %15 : vector<1x8x128xf32>
      %c0_9 = arith.constant 0 : index
      %c0_10 = arith.constant 0 : index
      %c0_11 = arith.constant 0 : index
      %17 = vector.load %arg6[%c0_9, %c0_10, %c0_11] : memref<1x8x128xf32, #tpu.memory_space<vmem>>, vector<1x8x128xf32>
      tpu.vector_store %arg6[%c0_9, %c0_10, %c0_11], %16 {strides = array<i32>} : memref<1x8x128xf32, #tpu.memory_space<vmem>>, vector<1x8x128xf32>,
    } else {
    }
    return
  }
  func.func @transform_0(%arg0: i32, %arg1: i32) -> (i32, i32) {
    %c0_i32 = arith.constant 0 : i32
    %c0_i32_0 = arith.constant 0 : i32
    return %arg0, %c0_i32 : i32, i32
  }
  func.func @transform_1(%arg0: i32, %arg1: i32) -> (i32, i32) {
    %c0_i32 = arith.constant 0 : i32
    %c0_i32_0 = arith.constant 0 : i32
    return %arg0, %c0_i32 : i32, i32
  }
  func.func @transform_2(%arg0: i32, %arg1: i32) -> (i32, i32) {
    %c0_i32 = arith.constant 0 : i32
    return %arg0, %arg1 : i32, i32
  }
  func.func @transform_3(%arg0: i32, %arg1: i32) -> (i32, i32) {
    %c0_i32 = arith.constant 0 : i32
    return %arg0, %arg1 : i32, i32
  }
  func.func @transform_4(%arg0: i32, %arg1: i32) -> (i32, i32, i32) {
    %c0_i32 = arith.constant 0 : i32
    %c0_i32_0 = arith.constant 0 : i32
    %c0_i32_1 = arith.constant 0 : i32
    return %arg0, %c0_i32, %c0_i32_0 : i32, i32, i32
  }
}

</mosaic_0001>

<bundles_post_ra>
// kernel: tpu_custom_call.1
= control target key start
LH: loop header
LB: loop body
LE: loop exit
PB: predicated region body
PF: predicated region fallthrough
CT: control target
= control target key end

     0   :  { %9 = vsyncpa [#allocation3], 0  ;;  %s368_s0 = inlined_call_operand.hbm [shape: f32[2,32], index: 0, kind: input, shape index: {}]   ;;  %s369_s1 = inlined_call_operand.hbm [shape: f32[2,32], index: 1, kind: input, shape index: {}]   ;;  %s370_s2 = inlined_call_operand.hbm [shape: f32[2,1024], index: 2, kind: input, shape index: {}]   ;;  %s371_s3 = inlined_call_operand.hbm [shape: f32[2,1024], index: 3, kind: input, shape index: {}]   ;;  %s372_s4 = inlined_call_operand.hbm [shape: f32[1,8,128], index: 4, kind: output, shape index: {}]  }
   0x1   :  { %10 = vsyncpa [#allocation6], 0 }
   0x2   :  { %11 = vsyncpa [#allocation9], 0 }
   0x3   :  { %12 = vsyncpa [#allocation4], 0  ;;  %s314_s15 = smov [#allocation5]   ;;  %s315_s17 = smov [#allocation2]  }
   0x4   :  { %s29_s16 = sshll.u32 %s314_s15, 4  ;;  %s19_s18 = sshll.u32 %s315_s17, 4  ;;  %s30_s16 = int_to_ptr.vmem [resolvable:$true] %s29_s16  ;;  %s20_s18 = int_to_ptr.vmem [resolvable:$true] %s19_s18 }
   0x5   :  { %s214_s19 = scalar_lea.vmem %s30_s16, 32  ;;  %p219_p1 = scmp.lt.s32.totalorder %s30_s16, %s30_s16 }
   0x6   :  { %p215_p0 = scmp.ne.s32.totalorder %s30_s16, %s214_s19  ;;  %p220_p2 = scmp.lt.s32.totalorder %s214_s19, %s214_s19 }
   0x8   :  { %p221_p3 = por %p220_p2, %p219_p1 }
   0xa   :  { %p222_p4 = pnand %p221_p3, %p215_p0 }
   0xc   :  { %225 = shalt.err (!%p222_p4)
}
   0xd   :  { %32 = dma.hbm_to_vmem [thread:$0]  %s369_s1, 32, %s30_s16, [#allocation6]  }
   0xe   :  { %s234_s22 = scalar_lea.vmem %s20_s18, 32  ;;  %p239_p6 = scmp.lt.s32.totalorder %s20_s18, %s20_s18 }
   0xf   :  { %p235_p5 = scmp.ne.s32.totalorder %s20_s18, %s234_s22  ;;  %p240_p7 = scmp.lt.s32.totalorder %s234_s22, %s234_s22 }
  0x11   :  { %p241_p8 = por %p240_p7, %p239_p6 }
  0x13   :  { %p242_p9 = pnand %p241_p8, %p235_p5 }
  0x15   :  { %245 = shalt.err (!%p242_p9)
}
  0x16   :  { %22 = dma.hbm_to_vmem [thread:$0]  %s368_s0, 32, %s20_s18, [#allocation3]  }
  0x17   :  { %s316_s25 = smov [#allocation7]   ;;  %s317_s27 = smov [#allocation8]  }
  0x18   :  { %s39_s26 = sshll.u32 %s316_s25, 4  ;;  %s49_s28 = sshll.u32 %s317_s27, 4  ;;  %s40_s26 = int_to_ptr.vmem [resolvable:$true] %s39_s26  ;;  %s50_s28 = int_to_ptr.vmem [resolvable:$true] %s49_s28 }
  0x19   :  { %s254_s29 = scalar_lea.vmem %s40_s26, 256  ;;  %p259_p11 = scmp.lt.s32.totalorder %s40_s26, %s40_s26 }
  0x1a   :  { %p255_p10 = scmp.ne.s32.totalorder %s40_s26, %s254_s29  ;;  %p260_p12 = scmp.lt.s32.totalorder %s254_s29, %s254_s29 }
  0x1c   :  { %p261_p13 = por %p260_p12, %p259_p11 }
  0x1e   :  { %p262_p0 = pnand %p261_p13, %p255_p10 }
  0x20   :  { %265 = shalt.err (!%p262_p0)
}
  0x21   :  { %42 = dma.hbm_to_vmem [thread:$0]  %s370_s2, 256, %s40_s26, [#allocation6]  }
  0x22   :  { %s274_s5 = scalar_lea.vmem %s50_s28, 256  ;;  %p279_p2 = scmp.lt.s32.totalorder %s50_s28, %s50_s28 }
  0x23   :  { %p275_p1 = scmp.ne.s32.totalorder %s50_s28, %s274_s5  ;;  %p280_p3 = scmp.lt.s32.totalorder %s274_s5, %s274_s5 }
  0x25   :  { %p281_p4 = por %p280_p3, %p279_p2 }
  0x27   :  { %p282_p5 = pnand %p281_p4, %p275_p1 }
  0x29   :  { %285 = shalt.err (!%p282_p5)
}
  0x2a   :  { %52 = dma.hbm_to_vmem [thread:$0]  %s371_s3, 256, %s50_s28, [#allocation9]  }
  0x2b   :  { %306 = dma.done.wait [#allocation3], 32  }
  0x2c   :  { %307 = vsyncadd [#allocation3], 4294967264 }
  0x2d   :  { %308 = dma.done.wait [#allocation6], 288  }
  0x2e   :  { %309 = vsyncadd [#allocation6], 4294967008 }
  0x2f   :  { %310 = dma.done.wait [#allocation9], 256  }
  0x30   :  { %311 = vsyncadd [#allocation9], 4294967040  ;;  %v79_v0 = vlaneseq  ;;  %v318_v1 = vmov 1983009808   ;;  %v65_v5 = vld [vmem:[#allocation7] sm:$0xff]  ;;  %v66_v6 = vld [vmem:[#allocation7 + $0x8] sm:$0xff] }
  0x31   :  { %v77_v2 = vunpack.c.l.s4 %v318_v1  ;;  %v67_v7 = vld [vmem:[#allocation8] sm:$0xff]  ;;  %v68_v8 = vld [vmem:[#allocation8 + $0x8] sm:$0xff]  ;;  %vm117_vm0 = vcmask 1041408   ;;  %vm154_vm1 = vcmask 254976   ;;  %s319_s8 = smov [#allocation10]  }
  0x32   :  { %v80_v4 = vshrl.u32 %v79_v0, 7  ;;  %v69_v9 = vsub.f32 %v65_v5, %v67_v7  ;;  %v147_v11 = vld [vmem:[#allocation5] sm:$0x3]  ;;  %v70_v12 = vsub.f32 %v66_v6, %v68_v8  ;;  %v146_v27 = vld [vmem:[#allocation2] sm:$0x3]  ;;  %s183_s9 = sshll.u32 %s319_s8, 4  ;;  %s184_s9 = int_to_ptr.vmem [resolvable:$true] %s183_s9 }
  0x33   :  { %v78_v3 = vunpack.c.0.s8 %v77_v2  ;;  %v151_v13 = vmul.f32 1.442695, %v147_v11  ;;  %v148_v33 = vadd.f32 1.0, %v147_v11  ;;  %v149_v34 = vmul.f32 %v146_v27, %v146_v27  ;;  %s286_s11 = scalar_lea.vmem %s184_s9, 128  ;;  %p291_p7 = scmp.lt.s32.totalorder %s184_s9, %s184_s9 }
  0x34   :  { %v71_v14 = vmul.f32 %v69_v9, %v69_v9  ;;  %v72_v15 = vmul.f32 %v70_v12, %v70_v12  ;;  %p287_p6 = scmp.ne.s32.totalorder %s184_s9, %s286_s11  ;;  %p292_p8 = scmp.lt.s32.totalorder %s286_s11, %s286_s11 }
  0x35   :  { %v81_v10 = vsub.s32 %v78_v3, %v80_v4  ;;  %204 = vpow2.f32 %v151_v13  ;;  %v150_v40 = vsub.f32 %v148_v33, %v149_v34 }
  0x36   :  { %v75_v16 = vcombine.high %v71_v14, %v71_v14  ;;  %v92_v18 = vcombine.high %v72_v15, %v72_v15  ;;  %p293_p9 = por %p292_p8, %p291_p7 }
  0x37   :  { %v82_v17 = vrot.slane %v71_v14, %v81_v10  ;;  %v99_v21 = vrot.slane %v72_v15, %v81_v10 }
  0x38   :  { %v89_v19 = vrot.slane %v75_v16, %v81_v10  ;;  %v106_v28 = vrot.slane %v92_v18, %v81_v10  ;;  %p294_p10 = pnand %p293_p9, %p287_p6 }
  0x39   :  { %v90_v20 = vcombine.high %v82_v17, %v82_v17  ;;  %v118_v22 = vsel %vm117_vm0, %v82_v17, 0.0  ;;  %v107_v29 = vcombine.high %v99_v21, %v99_v21  ;;  %v125_v32 = vsel %vm117_vm0, %v99_v21, 0.0 }
  0x3a   :  { %v91_v23 = vcombine.high %v89_v19, %v89_v19  ;;  %v121_v25 = vsel %vm117_vm0, %v89_v19, 0.0  ;;  %v108_v36 = vcombine.high %v106_v28, %v106_v28  ;;  %v129_v39 = vsel %vm117_vm0, %v106_v28, 0.0 }
  0x3b   :  { %v119_v24 = vsel %vm117_vm0, %v90_v20, 0.0  ;;  %v127_v37 = vsel %vm117_vm0, %v107_v29, 0.0 }
  0x3c   :  { %v120_v26 = vadd.f32 %v119_v24, %v118_v22  ;;  %v123_v30 = vsel %vm117_vm0, %v91_v23, 0.0  ;;  %v131_v43 = vsel %vm117_vm0, %v108_v36, 0.0 }
  0x3e   :  { %v122_v31 = vadd.f32 %v121_v25, %v120_v26 }
  0x40   :  { %v124_v35 = vadd.f32 %v123_v30, %v122_v31 }
  0x42   :  { %v126_v38 = vadd.f32 %v125_v32, %v124_v35  ;;  %v205_v41 = vpop.eup %204 }
  0x43   :  { %v153_v45 = vsub.f32 %v150_v40, %v205_v41 }
  0x44   :  { %v128_v42 = vadd.f32 %v127_v37, %v126_v38 }
  0x45   :  { %v155_v47 = vsel %vm154_vm1, %v153_v45, 0.0 }
  0x46   :  { %v130_v44 = vadd.f32 %v129_v39, %v128_v42 }
  0x48   :  { %v132_v46 = vadd.f32 %v131_v43, %v130_v44 }
  0x4a   :  { %133 = vadd.xlane.f32.xlu0 %v132_v46 }
  0x4e   :  { %156 = vadd.xlane.f32.xlu0 %v155_v47 }
  0xd3   :  { %v134_v48 = vpop.xlane.xlu0 %133 }
  0xd4   :  { %v135_v49 = vrot.slane %v134_v48, 4 }
  0xd6   :  { %v136_v50 = vadd.f32 %v135_v49, %v134_v48 }
  0xd7   :  { %v157_v51 = vpop.xlane.xlu0 %156 }
  0xd8   :  { %v137_v52 = vrot.slane %v136_v50, 2  ;;  %v158_v53 = vrot.slane %v157_v51, 4 }
  0xda   :  { %v159_v54 = vadd.f32 %v158_v53, %v157_v51  ;;  %v138_v55 = vadd.f32 %v137_v52, %v136_v50 }
  0xdc   :  { %v160_v56 = vrot.slane %v159_v54, 2  ;;  %v139_v57 = vrot.slane %v138_v55, 1 }
  0xde   :  { %v161_v58 = vadd.f32 %v160_v56, %v159_v54  ;;  %v140_v59 = vadd.f32 %v139_v57, %v138_v55 }
  0xe0   :  { %194 = vpush %v140_v59  ;;  %v162_v60 = vrot.slane %v161_v58, 1 }
  0xe2   :  { %v163_v61 = vadd.f32 %v162_v60, %v161_v58 }
  0xe4   :  { %196 = vpush %v163_v61 }
 0x111   :  { %s195_s2 = spop %194 }
 0x115   :  { %s197_s3 = spop %196 }
 0x116   :  { %s165_s7 = smul.f32 -0.5, %s197_s3 }
 0x118   :  { %s166_s10 = sadd.f32 %s195_s2, %s165_s7 }
 0x11a   :  { %v167_v62 = vstv %s166_s10 }
 0x11b   :  { %168 = vst [vmem:[#allocation10] sm:$0xff] %v167_v62 }
 0x11c   :  { %297 = shalt.err (!%p294_p10)
}
 0x11d   :  { %186 = dma.vmem_to_hbm [thread:$0]  %s184_s9, 128, %s372_s4, [#allocation4]  }
 0x11e   :  { %312 = dma.done.wait [#allocation4], 128  }
 0x11f   :  { %313 = vsyncadd [#allocation4], 4294967168 }
 0x120   :  { %190 = vsyncpa [#allocation3], 1 }
 0x121   :  { %191 = vsyncpa [#allocation6], 1 }
 0x122   :  { %192 = vsyncpa [#allocation9], 1 }
 0x123   :  { %193 = vsyncpa [#allocation4], 1 }

</bundles_post_ra>
